<compile_context>
chip_gen: v7x
topology: tpu7x:2x2x1
jax: 0.10.0
libtpu: 0.0.40
codegen_flags: <defaults>
</compile_context>

<pallas_src>
import jax
import jax.numpy as jnp
from jax.experimental import pallas as pl
from jax.experimental.pallas import tpu as pltpu


def classifier_kernel(xt_ref, w1_ref, b1_ref, w2_ref, b2_ref, w3_ref, b3_ref,
                      out_ref):
    # xt : (D_in, TM)  bf16   (batch on lanes)
    # w1 : (H,  D_in)  bf16   (PyTorch layout)
    # b1 : (H,  1)     f32
    # w2 : (H2, H)     bf16
    # b2 : (H2, 1)     f32
    # w3 : (H2, O)     f32    (fc3.weight transposed -> column(s))
    # b3 : (O,  1)     f32
    # out: (O,  TM)    f32    (lane-dense: batch on lanes)
    xt = xt_ref[...]

    # fc1 + ReLU  (MXU, f32 accumulate)
    h1 = jnp.dot(w1_ref[...], xt, preferred_element_type=jnp.float32)   # (H, TM)
    h1 = jnp.maximum(h1 + b1_ref[...], 0.0)

    # fc2 + ReLU
    h2 = jnp.dot(w2_ref[...], h1.astype(jnp.bfloat16),
                 preferred_element_type=jnp.float32)                    # (H2, TM)
    h2 = jnp.maximum(h2 + b2_ref[...], 0.0)

    # fc3: for output_size == 1 use VPU multiply + cross-sublane (XLU) reduce
    # instead of a wasteful N=1 MXU matmul; result is already lane-dense.
    _, out_cols = w3_ref.shape
    if out_cols == 1:
        y = jnp.sum(h2 * w3_ref[...], axis=0, keepdims=True)            # (1, TM)
    else:
        y = jnp.dot(w3_ref[...].T, h2, preferred_element_type=jnp.float32)  # (O, TM)

    y = jax.nn.sigmoid(y + b3_ref[...])
    out_ref[...] = y.astype(out_ref.dtype)


def classifier_forward(x, w1, b1, w2, b2, w3, b3, *, tm=1024):
    """Forward pass of Classifier.

    Parameters are in native PyTorch layout:
      x : (B, D_in) f32
      w1: (H, D_in), b1: (H,)
      w2: (H2, H),   b2: (H2,)      (H2 = H // 2)
      w3: (O, H2),   b3: (O,)
    Returns (B, O) float32.
    """
    B, D = x.shape
    H = w1.shape[0]
    H2 = w2.shape[0]
    O = w3.shape[0]

    def rup(n, m):
        return ((n + m - 1) // m) * m

    TM = min(rup(tm, 128), rup(B, 128))       # lane-dim tile, multiple of 128
    B_pad = rup(B, TM)
    grid = (B_pad // TM,)

    # Call-boundary layout plumbing: pad batch, transpose (batch -> lanes),
    # cast the big operands to bf16 (single fused XLA op).
    xt = jnp.pad(x, ((0, B_pad - B), (0, 0))).T.astype(jnp.bfloat16)    # (D, B_pad)
    w1b = w1.astype(jnp.bfloat16)                                       # (H, D)
    w2b = w2.astype(jnp.bfloat16)                                       # (H2, H)
    b1c = b1.reshape(H, 1).astype(jnp.float32)
    b2c = b2.reshape(H2, 1).astype(jnp.float32)
    w3c = w3.T.astype(jnp.float32)                                      # (H2, O)
    b3c = b3.reshape(O, 1).astype(jnp.float32)

    flops = 2 * B_pad * (D * H + H * H2 + H2 * O)
    bytes_accessed = int(
        xt.size * 2 + O * B_pad * 4 + w1b.size * 2 + w2b.size * 2
        + (b1c.size + b2c.size + w3c.size + b3c.size) * 4)

    out_t = pl.pallas_call(
        classifier_kernel,
        out_shape=jax.ShapeDtypeStruct((O, B_pad), jnp.float32),
        grid=grid,
        in_specs=[
            pl.BlockSpec((D, TM), lambda i: (0, i)),    # x^T tile (pipelined)
            pl.BlockSpec((H, D), lambda i: (0, 0)),     # weights: grid-invariant,
            pl.BlockSpec((H, 1), lambda i: (0, 0)),     # stay VMEM-resident
            pl.BlockSpec((H2, H), lambda i: (0, 0)),
            pl.BlockSpec((H2, 1), lambda i: (0, 0)),
            pl.BlockSpec((H2, O), lambda i: (0, 0)),
            pl.BlockSpec((O, 1), lambda i: (0, 0)),
        ],
        out_specs=pl.BlockSpec((O, TM), lambda i: (0, i)),
        compiler_params=pltpu.CompilerParams(
            dimension_semantics=("parallel",)),
        cost_estimate=pl.CostEstimate(
            flops=int(flops),
            transcendentals=int(B_pad * O),
            bytes_accessed=bytes_accessed),
    )(xt, w1b, b1c, w2b, b2c, w3c, b3c)

    return out_t[:, :B].T                               # (B, O) f32


def init_linear(kw, kb, fan_in, fan_out):
    """Deterministic init mimicking torch.nn.Linear default (U(+-1/sqrt(fan_in))).
    Weight in PyTorch layout (fan_out, fan_in); bias (fan_out,)."""
    bound = 1.0 / (fan_in ** 0.5)
    w = jax.random.uniform(kw, (fan_out, fan_in), jnp.float32, -bound, bound)
    b = jax.random.uniform(kb, (fan_out,), jnp.float32, -bound, bound)
    return w, b


if __name__ == "__main__":
    # Small shapes consistent with Classifier(input_size, hidden_size, output_size)
    batch = 16
    input_size = 32
    hidden_size = 32          # hidden // 2 = 16
    output_size = 1

    key = jax.random.PRNGKey(0)
    kx, k1w, k1b, k2w, k2b, k3w, k3b = jax.random.split(key, 7)

    x = jax.random.normal(kx, (batch, input_size), jnp.float32)
    w1, b1 = init_linear(k1w, k1b, input_size, hidden_size)
    w2, b2 = init_linear(k2w, k2b, hidden_size, hidden_size // 2)
    w3, b3 = init_linear(k3w, k3b, hidden_size // 2, output_size)

    out = classifier_forward(x, w1, b1, w2, b2, w3, b3)
    out = jax.block_until_ready(out)
    assert out.shape == (batch, output_size)

    # Pure-JAX f32 reference (PyTorch semantics: x @ W.T + b).
    ref32 = jnp.maximum(x @ w1.T + b1, 0.0)
    ref32 = jnp.maximum(ref32 @ w2.T + b2, 0.0)
    ref32 = jax.nn.sigmoid(ref32 @ w3.T + b3)

    # bf16-matched reference (same precision policy as the kernel).
    xb, w1b_, w2b_ = (a.astype(jnp.bfloat16) for a in (x, w1, w2))
    refb = jnp.maximum(
        jnp.dot(xb, w1b_.T, preferred_element_type=jnp.float32) + b1, 0.0)
    refb = jnp.maximum(
        jnp.dot(refb.astype(jnp.bfloat16), w2b_.T,
                preferred_element_type=jnp.float32) + b2, 0.0)
    refb = jax.nn.sigmoid(refb @ w3.T + b3)

    assert jnp.allclose(out, refb, atol=1e-3, rtol=1e-3), "mismatch vs bf16 reference"
    assert jnp.allclose(out, ref32, atol=3e-2, rtol=3e-2), "mismatch vs f32 reference"

    print("KERNEL_OK")
</pallas_src>

<mosaic_0001>
module attributes {stable_mosaic.version = 11 : i64} {
  func.func @classifier_kernel(%arg0: i32, %arg1: memref<32x128xbf16, #tpu.memory_space<vmem>>, %arg2: memref<32x32xbf16, #tpu.memory_space<vmem>>, %arg3: memref<32x1xf32, #tpu.memory_space<vmem>>, %arg4: memref<16x32xbf16, #tpu.memory_space<vmem>>, %arg5: memref<16x1xf32, #tpu.memory_space<vmem>>, %arg6: memref<16x1xf32, #tpu.memory_space<vmem>>, %arg7: memref<1x1xf32, #tpu.memory_space<vmem>>, %arg8: memref<1x128xf32, #tpu.memory_space<vmem>>) attributes {dimension_semantics = [#tpu.dimension_semantics<parallel>], iteration_bounds = array<i64: 1>, scalar_prefetch = 0 : i64, scratch_operands = 0 : i64, tpu.core_type = #tpu.core_type<tc>, window_params = [{transform_indices = @transform_0, window_bounds = array<i64: 32, 128>}, {pipeline_mode = #tpu.pipeline_mode<synchronous>, transform_indices = @transform_1, window_bounds = array<i64: 32, 32>}, {pipeline_mode = #tpu.pipeline_mode<synchronous>, transform_indices = @transform_2, window_bounds = array<i64: 32, 1>}, {pipeline_mode = #tpu.pipeline_mode<synchronous>, transform_indices = @transform_3, window_bounds = array<i64: 16, 32>}, {pipeline_mode = #tpu.pipeline_mode<synchronous>, transform_indices = @transform_4, window_bounds = array<i64: 16, 1>}, {pipeline_mode = #tpu.pipeline_mode<synchronous>, transform_indices = @transform_5, window_bounds = array<i64: 16, 1>}, {pipeline_mode = #tpu.pipeline_mode<synchronous>, transform_indices = @transform_6, window_bounds = array<i64: 1, 1>}, {transform_indices = @transform_7, window_bounds = array<i64: 1, 128>}]} {
    %c0 = arith.constant 0 : index
    %c0_0 = arith.constant 0 : index
    %0 = vector.load %arg1[%c0, %c0_0] : memref<32x128xbf16, #tpu.memory_space<vmem>>, vector<32x128xbf16>
    %c0_1 = arith.constant 0 : index
    %c0_2 = arith.constant 0 : index
    %1 = vector.load %arg2[%c0_1, %c0_2] : memref<32x32xbf16, #tpu.memory_space<vmem>>, vector<32x32xbf16>
    %cst = arith.constant dense<0.000000e+00> : vector<32x128xf32>
    %2 = tpu.matmul %1, %0, %cst {dimension_numbers = #tpu.dot_dimension_numbers<[1], [0], [0], [1], [0, 0, 1, 1], [], []>} : vector<32x32xbf16>, vector<32x128xbf16>, vector<32x128xf32> -> vector<32x128xf32>
    %c0_3 = arith.constant 0 : index
    %c0_4 = arith.constant 0 : index
    %3 = vector.load %arg3[%c0_3, %c0_4] : memref<32x1xf32, #tpu.memory_space<vmem>>, vector<32x1xf32>
    %4 = vector.broadcast %3 : vector<32x1xf32> to vector<32x128xf32>
    %5 = arith.addf %2, %4 : vector<32x128xf32>
    %cst_5 = arith.constant 0.000000e+00 : f32
    %6 = vector.broadcast %cst_5 : f32 to vector<32x128xf32>
    %7 = arith.maximumf %5, %6 : vector<32x128xf32>
    %c0_6 = arith.constant 0 : index
    %c0_7 = arith.constant 0 : index
    %8 = vector.load %arg4[%c0_6, %c0_7] : memref<16x32xbf16, #tpu.memory_space<vmem>>, vector<16x32xbf16>
    %9 = arith.truncf %7 : vector<32x128xf32> to vector<32x128xbf16>
    %cst_8 = arith.constant dense<0.000000e+00> : vector<16x128xf32>
    %10 = tpu.matmul %8, %9, %cst_8 {dimension_numbers = #tpu.dot_dimension_numbers<[1], [0], [0], [1], [0, 0, 1, 1], [], []>} : vector<16x32xbf16>, vector<32x128xbf16>, vector<16x128xf32> -> vector<16x128xf32>
    %c0_9 = arith.constant 0 : index
    %c0_10 = arith.constant 0 : index
    %11 = vector.load %arg5[%c0_9, %c0_10] : memref<16x1xf32, #tpu.memory_space<vmem>>, vector<16x1xf32>
    %12 = vector.broadcast %11 : vector<16x1xf32> to vector<16x128xf32>
    %13 = arith.addf %10, %12 : vector<16x128xf32>
    %cst_11 = arith.constant 0.000000e+00 : f32
    %14 = vector.broadcast %cst_11 : f32 to vector<16x128xf32>
    %15 = arith.maximumf %13, %14 : vector<16x128xf32>
    %c0_12 = arith.constant 0 : index
    %c0_13 = arith.constant 0 : index
    %16 = vector.load %arg6[%c0_12, %c0_13] : memref<16x1xf32, #tpu.memory_space<vmem>>, vector<16x1xf32>
    %17 = vector.broadcast %16 : vector<16x1xf32> to vector<16x128xf32>
    %18 = arith.mulf %15, %17 : vector<16x128xf32>
    %cst_14 = arith.constant dense<0.000000e+00> : vector<128xf32>
    %19 = vector.multi_reduction <add>, %18, %cst_14 [0] : vector<16x128xf32> to vector<128xf32>
    %20 = vector.shape_cast %19 : vector<128xf32> to vector<1x128xf32>
    %c0_15 = arith.constant 0 : index
    %c0_16 = arith.constant 0 : index
    %21 = vector.load %arg7[%c0_15, %c0_16] : memref<1x1xf32, #tpu.memory_space<vmem>>, vector<1x1xf32>
    %22 = vector.broadcast %21 : vector<1x1xf32> to vector<1x128xf32>
    %23 = arith.addf %20, %22 : vector<1x128xf32>
    %24 = arith.negf %23 : vector<1x128xf32>
    %25 = math.exp %24 : vector<1x128xf32>
    %cst_17 = arith.constant 1.000000e+00 : f32
    %26 = vector.broadcast %cst_17 : f32 to vector<1x128xf32>
    %27 = arith.addf %26, %25 : vector<1x128xf32>
    %28 = arith.divf %26, %27 : vector<1x128xf32>
    %c0_18 = arith.constant 0 : index
    %c0_19 = arith.constant 0 : index
    %29 = vector.load %arg8[%c0_18, %c0_19] : memref<1x128xf32, #tpu.memory_space<vmem>>, vector<1x128xf32>
    tpu.vector_store %arg8[%c0_18, %c0_19], %28 {strides = array<i32>} : memref<1x128xf32, #tpu.memory_space<vmem>>, vector<1x128xf32>,
    return
  }
  func.func @transform_0(%arg0: i32) -> (i32, i32) {
    %c0_i32 = arith.constant 0 : i32
    %c0_i32_0 = arith.constant 0 : i32
    return %c0_i32, %arg0 : i32, i32
  }
  func.func @transform_1(%arg0: i32) -> (i32, i32) {
    %c0_i32 = arith.constant 0 : i32
    %c0_i32_0 = arith.constant 0 : i32
    %c0_i32_1 = arith.constant 0 : i32
    return %c0_i32, %c0_i32_0 : i32, i32
  }
  func.func @transform_2(%arg0: i32) -> (i32, i32) {
    %c0_i32 = arith.constant 0 : i32
    %c0_i32_0 = arith.constant 0 : i32
    %c0_i32_1 = arith.constant 0 : i32
    return %c0_i32, %c0_i32_0 : i32, i32
  }
  func.func @transform_3(%arg0: i32) -> (i32, i32) {
    %c0_i32 = arith.constant 0 : i32
    %c0_i32_0 = arith.constant 0 : i32
    %c0_i32_1 = arith.constant 0 : i32
    return %c0_i32, %c0_i32_0 : i32, i32
  }
  func.func @transform_4(%arg0: i32) -> (i32, i32) {
    %c0_i32 = arith.constant 0 : i32
    %c0_i32_0 = arith.constant 0 : i32
    %c0_i32_1 = arith.constant 0 : i32
    return %c0_i32, %c0_i32_0 : i32, i32
  }
  func.func @transform_5(%arg0: i32) -> (i32, i32) {
    %c0_i32 = arith.constant 0 : i32
    %c0_i32_0 = arith.constant 0 : i32
    %c0_i32_1 = arith.constant 0 : i32
    return %c0_i32, %c0_i32_0 : i32, i32
  }
  func.func @transform_6(%arg0: i32) -> (i32, i32) {
    %c0_i32 = arith.constant 0 : i32
    %c0_i32_0 = arith.constant 0 : i32
    %c0_i32_1 = arith.constant 0 : i32
    return %c0_i32, %c0_i32_0 : i32, i32
  }
  func.func @transform_7(%arg0: i32) -> (i32, i32) {
    %c0_i32 = arith.constant 0 : i32
    %c0_i32_0 = arith.constant 0 : i32
    return %c0_i32, %arg0 : i32, i32
  }
}

</mosaic_0001>

<bundles_post_ra>
// kernel: tpu_custom_call.1
= control target key start
LH: loop header
LB: loop body
LE: loop exit
PB: predicated region body
PF: predicated region fallthrough
CT: control target
= control target key end

     0   :  { %s436_s0 = inlined_call_operand.vmem [shape: bf16[32,128], index: 0, kind: input, shape index: {}]   ;;  %s437_s1 = inlined_call_operand.vmem [shape: bf16[32,32], index: 1, kind: input, shape index: {}]   ;;  %s438_s2 = inlined_call_operand.vmem [shape: f32[32,1], index: 2, kind: input, shape index: {}]   ;;  %s439_s3 = inlined_call_operand.vmem [shape: bf16[16,32], index: 3, kind: input, shape index: {}]   ;;  %s440_s4 = inlined_call_operand.vmem [shape: f32[16,1], index: 4, kind: input, shape index: {}]   ;;  %s441_s5 = inlined_call_operand.vmem [shape: f32[16,1], index: 5, kind: input, shape index: {}]   ;;  %s442_s6 = inlined_call_operand.<no memory space> [shape: f32[1,1], index: 6, kind: input, shape index: {}]   ;;  %s443_s7 = inlined_call_operand.hbm [shape: f32[1,128], index: 7, kind: output, shape index: {}]  }
   0x1   :  { %v12_v0 = vstv %s442_s6 }
   0x2   :  { %13 = vst [vmem:[#allocation2] sm:$0x1] %v12_v0 }
   0x3   :  { %v302_v1 = vld [vmem:[%s436_s0] sm:$0xff]   ;;  %vm84_vm0 = vcmask 261120   ;;  %v303_v2 = vld [vmem:[%s436_s0 + $0x8] sm:$0xff]   ;;  %v335_v4 = vmov 0   ;;  %v40_v6 = vld [vmem:[%s438_s2 + $0x10] sm:$0xff] }
   0x4   :  { %280 = vmatprep.subr.bf16.mxu0 %v302_v1  ;;  %v304_v3 = vld [vmem:[%s437_s1] sm:$0xff]   ;;  %300 = vset.pattern.permute.xlu0 %v335_v4  ;;  %v305_v7 = vld [vmem:[%s437_s1 + $0x8] sm:$0xff]   ;;  %v41_v9 = vld [vmem:[%s438_s2 + $0x18] sm:$0xff] }
   0x5   :  { %281 = vmatpush3.bf16.msra.mxu0 %v302_v1  ;;  %301 = vset.pattern.permute.xlu1 %v335_v4  ;;  %v38_v5 = vld [vmem:[%s438_s2] sm:$0xff]  ;;  %v39_v8 = vld [vmem:[%s438_s2 + $0x8] sm:$0xff] }
   0x6   :  { %282 = vmatprep.subr.bf16.mxu0 %v303_v2  ;;  %284 = vmatprep.mubr.msk.bf16.mxu0 %vm84_vm0, %v304_v3 }
   0x7   :  { %44 = vperm.xlu0 %300, %v38_v5   ;;  %54 = vperm.xlu1 %301, %v40_v6  }
   0x9   :  { %283 = vmatpush3.bf16.msra.mxu0 %v303_v2 }
   0xa   :  { %14 = vsyncpa [#allocation4], 0  ;;  %v148_v10 = vld [vmem:[%s440_s4] sm:$0xff]  ;;  %v149_v11 = vld [vmem:[%s440_s4 + $0x8] sm:$0xff]  ;;  %v336_v15 = vmov 0.0   ;;  %vm337_vm1 = vmmov 0   ;;  %v238_v49 = vlaneseq }
   0xb   :  { %49 = vperm.xlu0 %300, %v39_v8   ;;  %59 = vperm.xlu1 %301, %v41_v9   ;;  %v211_v12 = vld [vmem:[%s441_s5] sm:$0xff]  ;;  %v212_v13 = vld [vmem:[%s441_s5 + $0x8] sm:$0xff] }
   0xc   :  { %285 = vmatmul.mubr.msk.bf16.vlgmr.msra.gmra.mrb[0].mxu0 %vm84_vm0, %v305_v7  ;;  %v232_v14 = vld [vmem:[#allocation2] sm:$0x1]  ;;  %288 = vmatprep.subr.bf16.mxu1 %v336_v15  ;;  %v239_v52 = vshrl.u32 %v238_v49, 7 }
   0xd   :  { %292 = vmatprep.mubr.msk.bf16.mxu1 %vm337_vm1, %v336_v15  ;;  %v306_v34 = vld [vmem:[%s439_s3] sm:$0xff]   ;;  %s338_s3 = smov [#allocation3]  }
   0xe   :  { %v240_v55 = vsub.s32 0, %v239_v52  ;;  %s256_s23 = sshll.u32 %s338_s3, 4  ;;  %s257_s23 = int_to_ptr.vmem [resolvable:$true] %s256_s23 }
   0xf   :  { %152 = vperm.xlu0 %300, %v148_v10   ;;  %157 = vperm.xlu1 %301, %v149_v11   ;;  %s311_s24 = scalar_lea.vmem %s257_s23, 16  ;;  %s315_s25 = scalar_lea.vmem %s257_s23, 32 }
  0x10   :  { %p312_p0 = scmp.ne.s32.totalorder %s257_s23, %s311_s24  ;;  %p316_p1 = scmp.lt.s32.totalorder %s257_s23, %s257_s23 }
  0x11   :  { %p317_p2 = scmp.lt.s32.totalorder %s315_s25, %s311_s24 }
  0x13   :  { %215 = vperm.xlu0 %300, %v211_v12   ;;  %220 = vperm.xlu1 %301, %v212_v13   ;;  %p318_p3 = por %p317_p2, %p316_p1 }
  0x15   :  { %p319_p4 = pnand %p318_p3, %p312_p0 }
  0x17   :  { %235 = vperm.xlu0 %300, %v232_v14  }
  0x86   :  { %v55_v16 = vpop.permute.xlu1 %54  ;;  %v45_v17 = vpop.permute.xlu0 %44 }
  0x8a   :  { %v60_v21 = vpop.permute.xlu1 %59  ;;  %v50_v24 = vpop.permute.xlu0 %49 }
  0x8e   :  { %v153_v35 = vpop.permute.xlu0 %152  ;;  %v158_v36 = vpop.permute.xlu1 %157 }
  0x92   :  { %v216_v45 = vpop.permute.xlu0 %215  ;;  %v221_v46 = vpop.permute.xlu1 %220 }
  0x96   :  { %v236_v57 = vpop.permute.xlu0 %235 }
  0x97   :  { %v241_v59 = vrot.slane %v236_v57, %v240_v55 }
  0xdf   :  { %v286_v18 = vpop.f32.mrb[0].mxu0 }
  0xe0   :  { %v134_v19 = vadd.f32 %v286_v18, %v55_v16  ;;  %v125_v20 = vpop.f32.mrb[1].mxu0 }
  0xe1   :  { %v126_v22 = vadd.f32 %v125_v20, %v45_v17  ;;  %v287_v23 = vpop.f32.mrb[2].mxu0 }
  0xe2   :  { %v137_v25 = vadd.f32 %v287_v23, %v60_v21  ;;  %v128_v26 = vpop.f32.mrb[3].mxu0  ;;  %v142_v28 = vmax.f32 %v134_v19, 0.0 }
  0xe3   :  { %v129_v27 = vadd.f32 %v128_v26, %v50_v24  ;;  %v140_v30 = vmax.f32 %v126_v22, 0.0 }
  0xe4   :  { %v143_v29 = vmax.f32 %v137_v25, 0.0 }
  0xe5   :  { %v141_v31 = vmax.f32 %v129_v27, 0.0 }
  0xe6   :  { %v147_v32 = vpack.c.bf16 %v143_v29, %v142_v28 }
  0xe7   :  { %v146_v33 = vpack.c.bf16 %v141_v31, %v140_v30 }
  0xe9   :  { %289 = vmatpush3.bf16.msra.mxu1 %v146_v33 }
  0xea   :  { %290 = vmatprep.subr.bf16.mxu1 %v336_v15 }
  0xed   :  { %291 = vmatpush3.bf16.msra.mxu1 %v147_v32 }
  0xf0   :  { %293 = vmatmul.mubr.msk.bf16.vlgmr.msra.gmra.mrb[0].mxu1 %vm84_vm0, %v306_v34 }
 0x1c3   :  { %v202_v37 = vpop.f32.mrb[0].mxu1 }
 0x1c4   :  { %v203_v38 = vadd.f32 %v202_v37, %v153_v35  ;;  %v294_v39 = vpop.f32.mrb[1].mxu1 }
 0x1c5   :  { %v205_v40 = vpop.f32.mrb[2].mxu1 }
 0x1c6   :  { %v209_v41 = vmax.f32 %v203_v38, 0.0  ;;  %v206_v42 = vadd.f32 %v205_v40, %v158_v36  ;;  %v295_v43 = vpop.f32.mrb[3].mxu1 }
 0x1c8   :  { %v210_v44 = vmax.f32 %v206_v42, 0.0  ;;  %v223_v47 = vmul.f32 %v216_v45, %v209_v41 }
 0x1ca   :  { %v224_v48 = vmul.f32 %v221_v46, %v210_v44 }
 0x1cc   :  { %v225_v50 = vadd.f32 %v224_v48, %v223_v47 }
 0x1ce   :  { %v226_v51 = vrot.slane %v225_v50, 4 }
 0x1d0   :  { %v227_v53 = vadd.f32 %v226_v51, %v225_v50 }
 0x1d2   :  { %v228_v54 = vrot.slane %v227_v53, 2 }
 0x1d4   :  { %v229_v56 = vadd.f32 %v228_v54, %v227_v53 }
 0x1d6   :  { %v230_v58 = vrot.slane %v229_v56, 1 }
 0x1d8   :  { %v231_v60 = vadd.f32 %v230_v58, %v229_v56 }
 0x1da   :  { %v242_v61 = vadd.f32 %v241_v59, %v231_v60 }
 0x1dc   :  { %v272_v62 = vmul.f32 -1.442695, %v242_v61 }
 0x1de   :  { %307 = vpow2.f32 %v272_v62 }
 0x1e8   :  { %v308_v63 = vpop.eup %307 }
 0x1e9   :  { %v246_v0 = vadd.f32 1.0, %v308_v63 }
 0x1eb   :  { %309 = vrcp.f32 %v246_v0 }
 0x1f5   :  { %v310_v1 = vpop.eup %309 }
 0x1f6   :  { %249 = vst [vmem:[#allocation3] sm:$0x1] %v310_v1 }
 0x1f7   :  { %322 = shalt.err (!%p319_p4)
}
 0x1f8   :  { %s323_s28 = scalar_lea.hbm %s443_s7, 16 }
 0x1f9   :  { %p324_p5 = scmp.ne.s32.totalorder %s443_s7, %s323_s28  ;;  %p327_p6 = scmp.lt.u32.totalorder %s323_s28, %s443_s7 }
 0x1fb   :  { %p329_p7 = pnand %p327_p6, %p324_p5 }
 0x1fd   :  { %332 = shalt.err (!%p329_p7)
}
 0x1fe   :  { %259 = dma.vmem_to_hbm [thread:$0]  %s257_s23, 16, %s443_s7, [#allocation4]  }
 0x1ff   :  { %333 = dma.done.wait [#allocation4], 16  }
 0x200   :  { %334 = vsyncadd [#allocation4], 4294967280 }
 0x201   :  { %263 = vsyncpa [#allocation4], 1 }

</bundles_post_ra>
